<compile_context>
chip_gen: v6e
topology: v6e:2x2x1
jax: 0.10.0
libtpu: 0.0.40
codegen_flags: <defaults>
</compile_context>

<pallas_src>
import functools

import jax
import jax.numpy as jnp
from jax.experimental import pallas as pl
from jax.experimental.pallas import tpu as pltpu

NUM_INPUTS = 14
NUM_OUTPUTS = 1


def _round_up(n, m):
    return ((n + m - 1) // m) * m


def _linear_kernel(w_ref, b_ref, x_ref, o_ref):
    # w_ref : SMEM (NUM_INPUTS,)  -- resident scalars
    # b_ref : SMEM (NUM_OUTPUTS,) -- resident scalar
    # x_ref : VMEM (NUM_INPUTS, TB)  -- batch on the lane axis
    # o_ref : VMEM (NUM_OUTPUTS, TB) -- lane-dense output slab
    acc = x_ref[0:1, :] * w_ref[0]
    for k in range(1, NUM_INPUTS):                 # unrolled VPU multiply-adds
        acc = acc + x_ref[k:k + 1, :] * w_ref[k]
    o_ref[...] = (acc + b_ref[0]).astype(o_ref.dtype)


@functools.partial(jax.jit, static_argnames=("tb",))
def linear_net(x, weight, bias, *, tb=4096):
    """x: (B, NUM_INPUTS); weight: (NUM_OUTPUTS, NUM_INPUTS) PyTorch-style;
    bias: (NUM_OUTPUTS,). Returns (B, NUM_OUTPUTS)."""
    B = x.shape[0]
    assert x.shape[1] == NUM_INPUTS
    assert weight.shape == (NUM_OUTPUTS, NUM_INPUTS)

    # Lane-dense batch tile: multiple of 128 lanes, capped at `tb`.
    TB = min(tb, _round_up(max(B, 1), 128))
    B_pad = _round_up(B, TB)
    grid = (B_pad // TB,)

    # Transposed, padded input: (NUM_INPUTS, B_pad) with batch on the lane axis.
    xT = x.astype(jnp.float32).T
    if B_pad != B:
        xT = jnp.pad(xT, ((0, 0), (0, B_pad - B)))

    w_vec = weight.reshape(NUM_INPUTS).astype(jnp.float32)
    b_vec = bias.reshape(NUM_OUTPUTS).astype(jnp.float32)

    cost = pl.CostEstimate(
        flops=2 * B_pad * NUM_INPUTS,
        transcendentals=0,
        bytes_accessed=4 * (xT.size + w_vec.size + b_vec.size
                            + NUM_OUTPUTS * B_pad),
    )

    out = pl.pallas_call(
        _linear_kernel,
        out_shape=jax.ShapeDtypeStruct((NUM_OUTPUTS, B_pad), jnp.float32),
        grid=grid,
        in_specs=[
            pl.BlockSpec(memory_space=pltpu.SMEM),               # weight (resident)
            pl.BlockSpec(memory_space=pltpu.SMEM),               # bias   (resident)
            pl.BlockSpec((NUM_INPUTS, TB), lambda i: (0, i)),    # x batch tile
        ],
        out_specs=pl.BlockSpec((NUM_OUTPUTS, TB), lambda i: (0, i)),
        compiler_params=pltpu.CompilerParams(
            dimension_semantics=("parallel",),                   # v7x: shard over both TCs
        ),
        cost_estimate=cost,
    )(w_vec, b_vec, xT)

    # Back to the PyTorch-facing (B, NUM_OUTPUTS) layout.
    return out[:, :B].T


if __name__ == "__main__":
    key = jax.random.PRNGKey(0)
    k_x, k_w, k_b, k_x2 = jax.random.split(key, 4)

    # Deterministic init matching torch.nn.Linear default: U(-1/sqrt(in), 1/sqrt(in))
    bound = 1.0 / (NUM_INPUTS ** 0.5)
    weight = jax.random.uniform(
        k_w, (NUM_OUTPUTS, NUM_INPUTS), minval=-bound, maxval=bound, dtype=jnp.float32
    )
    bias = jax.random.uniform(
        k_b, (NUM_OUTPUTS,), minval=-bound, maxval=bound, dtype=jnp.float32
    )

    # Small batch (single 128-wide tile after padding).
    batch = 8
    x = jax.random.normal(k_x, (batch, NUM_INPUTS), dtype=jnp.float32)
    y = linear_net(x, weight, bias)
    jax.block_until_ready(y)
    y_ref = x @ weight.T + bias
    assert y.shape == (batch, NUM_OUTPUTS)
    assert jnp.allclose(y, y_ref, atol=1e-5, rtol=1e-5)

    # Batch not divisible by 128 (exercises wrapper-side padding / slicing).
    batch2 = 200
    x2 = jax.random.normal(k_x2, (batch2, NUM_INPUTS), dtype=jnp.float32)
    y2 = linear_net(x2, weight, bias)
    jax.block_until_ready(y2)
    y2_ref = x2 @ weight.T + bias
    assert y2.shape == (batch2, NUM_OUTPUTS)
    assert jnp.allclose(y2, y2_ref, atol=1e-5, rtol=1e-5)

    print("KERNEL_OK")
</pallas_src>

<mosaic_0001>
module attributes {stable_mosaic.version = 11 : i64} {
  func.func @_linear_kernel(%arg0: i32, %arg1: memref<14xf32, #tpu.memory_space<smem>>, %arg2: memref<1xf32, #tpu.memory_space<smem>>, %arg3: memref<14x128xf32, #tpu.memory_space<vmem>>, %arg4: memref<1x128xf32, #tpu.memory_space<vmem>>) attributes {dimension_semantics = [#tpu.dimension_semantics<parallel>], iteration_bounds = array<i64: 1>, scalar_prefetch = 0 : i64, scratch_operands = 0 : i64, tpu.core_type = #tpu.core_type<tc>, window_params = [{transform_indices = @transform_0, window_bounds = array<i64: 14>}, {transform_indices = @transform_1, window_bounds = array<i64: 1>}, {transform_indices = @transform_2, window_bounds = array<i64: 14, 128>}, {transform_indices = @transform_3, window_bounds = array<i64: 1, 128>}]} {
    %c0 = arith.constant 0 : index
    %c0_0 = arith.constant 0 : index
    %0 = vector.load %arg3[%c0, %c0_0] : memref<14x128xf32, #tpu.memory_space<vmem>>, vector<1x128xf32>
    %c0_1 = arith.constant 0 : index
    %1 = memref.load %arg1[%c0_1] : memref<14xf32, #tpu.memory_space<smem>>
    %2 = vector.broadcast %1 : f32 to vector<1x128xf32>
    %3 = arith.mulf %0, %2 : vector<1x128xf32>
    %c1 = arith.constant 1 : index
    %c0_2 = arith.constant 0 : index
    %4 = vector.load %arg3[%c1, %c0_2] : memref<14x128xf32, #tpu.memory_space<vmem>>, vector<1x128xf32>
    %c1_3 = arith.constant 1 : index
    %5 = memref.load %arg1[%c1_3] : memref<14xf32, #tpu.memory_space<smem>>
    %6 = vector.broadcast %5 : f32 to vector<1x128xf32>
    %7 = arith.mulf %4, %6 : vector<1x128xf32>
    %8 = arith.addf %3, %7 : vector<1x128xf32>
    %c2 = arith.constant 2 : index
    %c0_4 = arith.constant 0 : index
    %9 = vector.load %arg3[%c2, %c0_4] : memref<14x128xf32, #tpu.memory_space<vmem>>, vector<1x128xf32>
    %c2_5 = arith.constant 2 : index
    %10 = memref.load %arg1[%c2_5] : memref<14xf32, #tpu.memory_space<smem>>
    %11 = vector.broadcast %10 : f32 to vector<1x128xf32>
    %12 = arith.mulf %9, %11 : vector<1x128xf32>
    %13 = arith.addf %8, %12 : vector<1x128xf32>
    %c3 = arith.constant 3 : index
    %c0_6 = arith.constant 0 : index
    %14 = vector.load %arg3[%c3, %c0_6] : memref<14x128xf32, #tpu.memory_space<vmem>>, vector<1x128xf32>
    %c3_7 = arith.constant 3 : index
    %15 = memref.load %arg1[%c3_7] : memref<14xf32, #tpu.memory_space<smem>>
    %16 = vector.broadcast %15 : f32 to vector<1x128xf32>
    %17 = arith.mulf %14, %16 : vector<1x128xf32>
    %18 = arith.addf %13, %17 : vector<1x128xf32>
    %c4 = arith.constant 4 : index
    %c0_8 = arith.constant 0 : index
    %19 = vector.load %arg3[%c4, %c0_8] : memref<14x128xf32, #tpu.memory_space<vmem>>, vector<1x128xf32>
    %c4_9 = arith.constant 4 : index
    %20 = memref.load %arg1[%c4_9] : memref<14xf32, #tpu.memory_space<smem>>
    %21 = vector.broadcast %20 : f32 to vector<1x128xf32>
    %22 = arith.mulf %19, %21 : vector<1x128xf32>
    %23 = arith.addf %18, %22 : vector<1x128xf32>
    %c5 = arith.constant 5 : index
    %c0_10 = arith.constant 0 : index
    %24 = vector.load %arg3[%c5, %c0_10] : memref<14x128xf32, #tpu.memory_space<vmem>>, vector<1x128xf32>
    %c5_11 = arith.constant 5 : index
    %25 = memref.load %arg1[%c5_11] : memref<14xf32, #tpu.memory_space<smem>>
    %26 = vector.broadcast %25 : f32 to vector<1x128xf32>
    %27 = arith.mulf %24, %26 : vector<1x128xf32>
    %28 = arith.addf %23, %27 : vector<1x128xf32>
    %c6 = arith.constant 6 : index
    %c0_12 = arith.constant 0 : index
    %29 = vector.load %arg3[%c6, %c0_12] : memref<14x128xf32, #tpu.memory_space<vmem>>, vector<1x128xf32>
    %c6_13 = arith.constant 6 : index
    %30 = memref.load %arg1[%c6_13] : memref<14xf32, #tpu.memory_space<smem>>
    %31 = vector.broadcast %30 : f32 to vector<1x128xf32>
    %32 = arith.mulf %29, %31 : vector<1x128xf32>
    %33 = arith.addf %28, %32 : vector<1x128xf32>
    %c7 = arith.constant 7 : index
    %c0_14 = arith.constant 0 : index
    %34 = vector.load %arg3[%c7, %c0_14] : memref<14x128xf32, #tpu.memory_space<vmem>>, vector<1x128xf32>
    %c7_15 = arith.constant 7 : index
    %35 = memref.load %arg1[%c7_15] : memref<14xf32, #tpu.memory_space<smem>>
    %36 = vector.broadcast %35 : f32 to vector<1x128xf32>
    %37 = arith.mulf %34, %36 : vector<1x128xf32>
    %38 = arith.addf %33, %37 : vector<1x128xf32>
    %c8 = arith.constant 8 : index
    %c0_16 = arith.constant 0 : index
    %39 = vector.load %arg3[%c8, %c0_16] : memref<14x128xf32, #tpu.memory_space<vmem>>, vector<1x128xf32>
    %c8_17 = arith.constant 8 : index
    %40 = memref.load %arg1[%c8_17] : memref<14xf32, #tpu.memory_space<smem>>
    %41 = vector.broadcast %40 : f32 to vector<1x128xf32>
    %42 = arith.mulf %39, %41 : vector<1x128xf32>
    %43 = arith.addf %38, %42 : vector<1x128xf32>
    %c9 = arith.constant 9 : index
    %c0_18 = arith.constant 0 : index
    %44 = vector.load %arg3[%c9, %c0_18] : memref<14x128xf32, #tpu.memory_space<vmem>>, vector<1x128xf32>
    %c9_19 = arith.constant 9 : index
    %45 = memref.load %arg1[%c9_19] : memref<14xf32, #tpu.memory_space<smem>>
    %46 = vector.broadcast %45 : f32 to vector<1x128xf32>
    %47 = arith.mulf %44, %46 : vector<1x128xf32>
    %48 = arith.addf %43, %47 : vector<1x128xf32>
    %c10 = arith.constant 10 : index
    %c0_20 = arith.constant 0 : index
    %49 = vector.load %arg3[%c10, %c0_20] : memref<14x128xf32, #tpu.memory_space<vmem>>, vector<1x128xf32>
    %c10_21 = arith.constant 10 : index
    %50 = memref.load %arg1[%c10_21] : memref<14xf32, #tpu.memory_space<smem>>
    %51 = vector.broadcast %50 : f32 to vector<1x128xf32>
    %52 = arith.mulf %49, %51 : vector<1x128xf32>
    %53 = arith.addf %48, %52 : vector<1x128xf32>
    %c11 = arith.constant 11 : index
    %c0_22 = arith.constant 0 : index
    %54 = vector.load %arg3[%c11, %c0_22] : memref<14x128xf32, #tpu.memory_space<vmem>>, vector<1x128xf32>
    %c11_23 = arith.constant 11 : index
    %55 = memref.load %arg1[%c11_23] : memref<14xf32, #tpu.memory_space<smem>>
    %56 = vector.broadcast %55 : f32 to vector<1x128xf32>
    %57 = arith.mulf %54, %56 : vector<1x128xf32>
    %58 = arith.addf %53, %57 : vector<1x128xf32>
    %c12 = arith.constant 12 : index
    %c0_24 = arith.constant 0 : index
    %59 = vector.load %arg3[%c12, %c0_24] : memref<14x128xf32, #tpu.memory_space<vmem>>, vector<1x128xf32>
    %c12_25 = arith.constant 12 : index
    %60 = memref.load %arg1[%c12_25] : memref<14xf32, #tpu.memory_space<smem>>
    %61 = vector.broadcast %60 : f32 to vector<1x128xf32>
    %62 = arith.mulf %59, %61 : vector<1x128xf32>
    %63 = arith.addf %58, %62 : vector<1x128xf32>
    %c13 = arith.constant 13 : index
    %c0_26 = arith.constant 0 : index
    %64 = vector.load %arg3[%c13, %c0_26] : memref<14x128xf32, #tpu.memory_space<vmem>>, vector<1x128xf32>
    %c13_27 = arith.constant 13 : index
    %65 = memref.load %arg1[%c13_27] : memref<14xf32, #tpu.memory_space<smem>>
    %66 = vector.broadcast %65 : f32 to vector<1x128xf32>
    %67 = arith.mulf %64, %66 : vector<1x128xf32>
    %68 = arith.addf %63, %67 : vector<1x128xf32>
    %c0_28 = arith.constant 0 : index
    %69 = memref.load %arg2[%c0_28] : memref<1xf32, #tpu.memory_space<smem>>
    %70 = vector.broadcast %69 : f32 to vector<1x128xf32>
    %71 = arith.addf %68, %70 : vector<1x128xf32>
    %c0_29 = arith.constant 0 : index
    %c0_30 = arith.constant 0 : index
    %72 = vector.load %arg4[%c0_29, %c0_30] : memref<1x128xf32, #tpu.memory_space<vmem>>, vector<1x128xf32>
    tpu.vector_store %arg4[%c0_29, %c0_30], %71 {strides = array<i32>} : memref<1x128xf32, #tpu.memory_space<vmem>>, vector<1x128xf32>,
    return
  }
  func.func @transform_0(%arg0: i32) -> i32 {
    %c0_i32 = arith.constant 0 : i32
    %c0_i32_0 = arith.constant 0 : i32
    return %c0_i32 : i32
  }
  func.func @transform_1(%arg0: i32) -> i32 {
    %c0_i32 = arith.constant 0 : i32
    %c0_i32_0 = arith.constant 0 : i32
    return %c0_i32 : i32
  }
  func.func @transform_2(%arg0: i32) -> (i32, i32) {
    %c0_i32 = arith.constant 0 : i32
    %c0_i32_0 = arith.constant 0 : i32
    return %c0_i32, %arg0 : i32, i32
  }
  func.func @transform_3(%arg0: i32) -> (i32, i32) {
    %c0_i32 = arith.constant 0 : i32
    %c0_i32_0 = arith.constant 0 : i32
    return %c0_i32, %arg0 : i32, i32
  }
}

</mosaic_0001>

<bundles_post_ra>
// kernel: linear_net.1
= control target key start
LH: loop header
LB: loop body
LE: loop exit
PB: predicated region body
PF: predicated region fallthrough
CT: control target
= control target key end

     0   :  { %9 = vsyncpa [#allocation4], 0  ;;  %s206_s0 = inlined_call_operand.vmem [shape: f32[14], index: 0, kind: input, shape index: {}]   ;;  %s207_s1 = inlined_call_operand.<no memory space> [shape: f32[1], index: 1, kind: input, shape index: {}]   ;;  %s208_s2 = inlined_call_operand.vmem [shape: f32[14,128], index: 2, kind: input, shape index: {}]   ;;  %s209_s3 = inlined_call_operand.vmem [shape: f32[1,128], index: 3, kind: output, shape index: {}]  }
   0x1   :  { %s16_s14 = sshll.u32 %s206_s0, 4  ;;  %s17_s14 = int_to_ptr.vmem [resolvable:$true] %s16_s14 }
   0x2   :  { %s120_s15 = scalar_lea.vmem %s17_s14, 16  ;;  %p125_p1 = scmp.lt.s32.totalorder %s17_s14, %s17_s14 }
   0x3   :  { %p121_p0 = scmp.ne.s32.totalorder %s17_s14, %s120_s15  ;;  %p126_p2 = scmp.lt.s32.totalorder %s120_s15, %s120_s15 }
   0x5   :  { %p127_p3 = por %p126_p2, %p125_p1 }
   0x7   :  { %p128_p4 = pnand %p127_p3, %p121_p0 }
   0x9   :  { %131 = shalt.err (!%p128_p4)
}
   0xa   :  { %s134_s16 = smov [#allocation3]  }
   0xb   :  { %19 = dma.vmem_to_smem %s17_s14, 16, %s134_s16, [#allocation4]  }
   0xc   :  { %132 = dma.done.wait [#allocation4], 16  }
   0xd   :  { %133 = vsyncadd [#allocation4], 4294967280 }
   0xe   :  { %27 = sfence }
   0xf   :  { %s29_s17 = sld [smem:[#allocation3]]  ;;  %v28_v0 = vld [vmem:[%s208_s2] sm:$0x1]  ;;  %v32_v1 = vld [vmem:[%s208_s2 + $0x1] sm:$0x1]  ;;  %v98_v54 = vstv %s207_s1 }
  0x10   :  { %s106_s18 = sld [smem:[#allocation3 + $0x1]]  ;;  %v37_v3 = vld [vmem:[%s208_s2 + $0x2] sm:$0x1]  ;;  %v42_v6 = vld [vmem:[%s208_s2 + $0x3] sm:$0x1] }
  0x11   :  { %s107_s19 = sld [smem:[#allocation3 + $0x2]]  ;;  %v47_v11 = vld [vmem:[%s208_s2 + $0x4] sm:$0x1]  ;;  %v52_v15 = vld [vmem:[%s208_s2 + $0x5] sm:$0x1] }
  0x12   :  { %s108_s20 = sld [smem:[#allocation3 + $0x3]]  ;;  %v57_v19 = vld [vmem:[%s208_s2 + $0x6] sm:$0x1]  ;;  %v62_v23 = vld [vmem:[%s208_s2 + $0x7] sm:$0x1] }
  0x13   :  { %s109_s0 = sld [smem:[#allocation3 + $0x4]]  ;;  %v67_v27 = vld [vmem:[%s208_s2 + $0x8] sm:$0x1]  ;;  %v72_v31 = vld [vmem:[%s208_s2 + $0x9] sm:$0x1] }
  0x14   :  { %s110_s25 = sld [smem:[#allocation3 + $0x5]]  ;;  %v77_v35 = vld [vmem:[%s208_s2 + $0xa] sm:$0x1]  ;;  %v82_v39 = vld [vmem:[%s208_s2 + $0xb] sm:$0x1] }
  0x15   :  { %v30_v2 = vstv %s29_s17  ;;  %s111_s28 = sld [smem:[#allocation3 + $0x6]]  ;;  %v87_v43 = vld [vmem:[%s208_s2 + $0xc] sm:$0x1]  ;;  %v92_v47 = vld [vmem:[%s208_s2 + $0xd] sm:$0x1] }
  0x16   :  { %v31_v4 = vmul.f32 %v30_v2, %v28_v0  ;;  %v34_v5 = vstv %s106_s18  ;;  %s112_s4 = sld [smem:[#allocation3 + $0x7]] }
  0x17   :  { %v35_v7 = vmul.f32 %v34_v5, %v32_v1  ;;  %v39_v8 = vstv %s107_s19  ;;  %s113_s7 = sld [smem:[#allocation3 + $0x8]] }
  0x18   :  { %v40_v9 = vmul.f32 %v39_v8, %v37_v3  ;;  %v44_v10 = vstv %s108_s20  ;;  %s114_s10 = sld [smem:[#allocation3 + $0x9]] }
  0x19   :  { %v36_v12 = vadd.f32 %v35_v7, %v31_v4  ;;  %v45_v13 = vmul.f32 %v44_v10, %v42_v6  ;;  %v49_v14 = vstv %s109_s0  ;;  %s115_s13 = sld [smem:[#allocation3 + $0xa]] }
  0x1a   :  { %v54_v16 = vstv %s110_s25  ;;  %v50_v18 = vmul.f32 %v49_v14, %v47_v11  ;;  %s116_s16 = sld [smem:[#allocation3 + $0xb]] }
  0x1b   :  { %v41_v17 = vadd.f32 %v40_v9, %v36_v12  ;;  %v59_v20 = vstv %s111_s28  ;;  %v55_v22 = vmul.f32 %v54_v16, %v52_v15  ;;  %s117_s19 = sld [smem:[#allocation3 + $0xc]] }
  0x1c   :  { %v64_v24 = vstv %s112_s4  ;;  %v60_v26 = vmul.f32 %v59_v20, %v57_v19  ;;  %s118_s22 = sld [smem:[#allocation3 + $0xd]] }
  0x1d   :  { %v46_v21 = vadd.f32 %v45_v13, %v41_v17  ;;  %v69_v28 = vstv %s113_s7  ;;  %v65_v30 = vmul.f32 %v64_v24, %v62_v23 }
  0x1e   :  { %v74_v32 = vstv %s114_s10  ;;  %v70_v34 = vmul.f32 %v69_v28, %v67_v27 }
  0x1f   :  { %v51_v25 = vadd.f32 %v50_v18, %v46_v21  ;;  %v79_v36 = vstv %s115_s13  ;;  %v75_v38 = vmul.f32 %v74_v32, %v72_v31 }
  0x20   :  { %v84_v40 = vstv %s116_s16  ;;  %v80_v42 = vmul.f32 %v79_v36, %v77_v35 }
  0x21   :  { %v56_v29 = vadd.f32 %v55_v22, %v51_v25  ;;  %v89_v44 = vstv %s117_s19  ;;  %v85_v46 = vmul.f32 %v84_v40, %v82_v39 }
  0x22   :  { %v94_v48 = vstv %s118_s22  ;;  %v90_v50 = vmul.f32 %v89_v44, %v87_v43 }
  0x23   :  { %v61_v33 = vadd.f32 %v60_v26, %v56_v29  ;;  %v95_v52 = vmul.f32 %v94_v48, %v92_v47 }
  0x25   :  { %v66_v37 = vadd.f32 %v65_v30, %v61_v33 }
  0x27   :  { %v71_v41 = vadd.f32 %v70_v34, %v66_v37 }
  0x29   :  { %v76_v45 = vadd.f32 %v75_v38, %v71_v41 }
  0x2b   :  { %v81_v49 = vadd.f32 %v80_v42, %v76_v45 }
  0x2d   :  { %v86_v51 = vadd.f32 %v85_v46, %v81_v49 }
  0x2f   :  { %v91_v53 = vadd.f32 %v90_v50, %v86_v51 }
  0x31   :  { %v96_v55 = vadd.f32 %v95_v52, %v91_v53 }
  0x33   :  { %v99_v56 = vadd.f32 %v98_v54, %v96_v55 }
  0x35   :  { %100 = vst [vmem:[%s209_s3] sm:$0x1] %v99_v56 }
  0x36   :  { %105 = vsyncpa [#allocation4], 1 }

</bundles_post_ra>
